<compile_context>
chip_gen: v5e
topology: v5e:2x2
jax: 0.10.0
libtpu: 0.0.40
codegen_flags: <defaults>
</compile_context>

<pallas_src>
import functools
import math

import numpy as np
import jax
import jax.numpy as jnp
from jax import lax
from jax.experimental import pallas as pl
from jax.experimental.pallas import tpu as pltpu


_NEG_BIG = -1e30   # finite mask fill: no NaN even on fully-masked rows.


def _ln_qkv_kernel(tokens_ref, gamma_ref, beta_ref, wq_ref, wk_ref, wv_ref,
                   q_ref, k_ref, v_ref, *, compute_dtype):
    """Grid step = (batch n, sequence tile t).

    tokens_ref : (1, Lt, E)   f32
    wq/wk/wv   : (E, H*Dh)    compute_dtype (W_q pre-scaled by 1/sqrt(Dh))
    q/k/v_ref  : (1, Lt, H*Dh) f32  (lane-dense slabs)
    """
    x = tokens_ref[0]                                    # (Lt, E) f32
    mean = jnp.mean(x, axis=-1, keepdims=True)
    xc = x - mean
    var = jnp.mean(xc * xc, axis=-1, keepdims=True)
    ln = xc * lax.rsqrt(var + 1e-5) * gamma_ref[0] + beta_ref[0]
    ln_c = ln.astype(compute_dtype)

    q_ref[0] = jnp.dot(ln_c, wq_ref[...],
                       preferred_element_type=jnp.float32).astype(q_ref.dtype)
    k_ref[0] = jnp.dot(ln_c, wk_ref[...],
                       preferred_element_type=jnp.float32).astype(k_ref.dtype)
    v_ref[0] = jnp.dot(ln_c, wv_ref[...],
                       preferred_element_type=jnp.float32).astype(v_ref.dtype)


def _flash_attn_kernel(tokens_ref, q_ref, k_ref, v_ref, wout_ref, out_ref,
                       m_sc, l_sc, acc_sc, *,
                       num_heads, compute_dtype, approx_recip):
    """Grid = (batch n, q tile, kv tile); kv is the innermost (arbitrary) axis.

    tokens_ref : (1, Lq, E)      f32  (residual)
    q_ref      : (1, H, Lq, Dh)  compute_dtype (scale already folded in)
    k/v_ref    : (1, H, Lkv, Dh) compute_dtype
    wout_ref   : (H, Dh, E)      compute_dtype
    out_ref    : (1, Lq, E)      f32
    m_sc/l_sc  : (H, Lq, 1) f32  acc_sc : (H, Lq, Dh) f32
    """
    qi = pl.program_id(1)
    kv = pl.program_id(2)

    @pl.when(kv <= qi)               # causality: skip above-diagonal kv tiles
    def _compute():
        @pl.when(kv == 0)
        def _init():
            m_sc[...] = jnp.full(m_sc.shape, _NEG_BIG, dtype=m_sc.dtype)
            l_sc[...] = jnp.zeros(l_sc.shape, dtype=l_sc.dtype)
            acc_sc[...] = jnp.zeros(acc_sc.shape, dtype=acc_sc.dtype)

        qh = q_ref[0]                # (H, Lq, Dh)
        kh = k_ref[0]                # (H, Lkv, Dh)
        vh = v_ref[0]                # (H, Lkv, Dh)

        # Head-batched scores: contract Dh directly, no kh.T transpose.
        s = jnp.einsum('hqd,hkd->hqk', qh, kh,
                       preferred_element_type=jnp.float32)   # (H, Lq, Lkv)

        lq, lkv = s.shape[1], s.shape[2]
        row = lax.broadcasted_iota(jnp.int32, (lq, lkv), 0)
        col = lax.broadcasted_iota(jnp.int32, (lq, lkv), 1)
        # Only the diagonal tile needs the intra-tile causal mask.
        allowed = jnp.logical_or(kv < qi, row >= col)
        s = jnp.where(allowed[None, :, :], s, _NEG_BIG)

        m_prev = m_sc[...]
        m_new = jnp.maximum(m_prev, jnp.max(s, axis=-1, keepdims=True))
        alpha = jnp.exp(m_prev - m_new)
        p = jnp.exp(s - m_new)
        l_sc[...] = alpha * l_sc[...] + jnp.sum(p, axis=-1, keepdims=True)
        acc_sc[...] = alpha * acc_sc[...] + jnp.einsum(
            'hqk,hkd->hqd', p.astype(compute_dtype), vh,
            preferred_element_type=jnp.float32)
        m_sc[...] = m_new

        @pl.when(kv == qi)           # diagonal tile == last causal kv step
        def _finalize():
            if approx_recip:
                o = acc_sc[...] * pl.reciprocal(l_sc[...], approx=True)
            else:
                o = acc_sc[...] / l_sc[...]
            o = o.astype(compute_dtype)                    # (H, Lq, Dh)
            w = wout_ref[...]                              # (H, Dh, E)
            out = tokens_ref[0]                            # residual, f32
            for h in range(num_heads):                     # static leading-dim
                out = out + jnp.dot(o[h], w[h],
                                    preferred_element_type=jnp.float32)
            out_ref[0] = out.astype(out_ref.dtype)


def multi_head_causal_attention(tokens, ln_gamma, ln_beta, w_qkv, w_out, *,
                                num_heads, head_dim, block_l=None,
                                compute_dtype=jnp.bfloat16,
                                vmem_limit_bytes=None):
    """tokens: (N, L, E) f32.  w_qkv: (E, 3*H*Dh), w_out: (H*Dh, E)
    (transposes of the PyTorch nn.Linear weights).
    Returns (attention_output (N,L,E), k (N,H,L,Dh), v (N,H,L,Dh))."""
    N, L, E = tokens.shape
    H, Dh = num_heads, head_dim
    HD = H * Dh
    assert w_qkv.shape == (E, 3 * HD) and w_out.shape == (HD, E)

    if block_l is None:
        block_l = L if L <= 256 else 256
    assert L % block_l == 0 and (block_l == L or block_l % 8 == 0)
    n_tiles = L // block_l

    f32 = jnp.float32
    cdt = np.dtype(compute_dtype)
    cdt_bytes = cdt.itemsize
    approx_recip = (cdt != np.dtype(np.float32))

    # Split the QKV weight into three lane-dense projections and fold the
    # softmax scale into W_q (q is never an exposed output -> exact).
    scale = 1.0 / math.sqrt(Dh)
    wq = (w_qkv[:, 0 * HD:1 * HD] * scale).astype(compute_dtype)
    wk = w_qkv[:, 1 * HD:2 * HD].astype(compute_dtype)
    wv = w_qkv[:, 2 * HD:3 * HD].astype(compute_dtype)
    wout3 = w_out.reshape(H, Dh, E).astype(compute_dtype)

    ln_gamma = ln_gamma.reshape(1, E).astype(f32)
    ln_beta = ln_beta.reshape(1, E).astype(f32)

    # ---------------- Kernel 1: LayerNorm + QKV projection -----------------
    qkv_cost = pl.CostEstimate(
        flops=2 * N * L * E * 3 * HD,
        transcendentals=N * L,
        bytes_accessed=4 * N * L * E + 3 * cdt_bytes * E * HD
                       + 3 * 4 * N * L * HD)
    qkv_grid = pltpu.PrefetchScalarGridSpec(
        num_scalar_prefetch=0,
        grid=(N, n_tiles),
        in_specs=[
            pl.BlockSpec((1, block_l, E), lambda n, t: (n, t, 0)),
            pl.BlockSpec((1, E), lambda n, t: (0, 0)),
            pl.BlockSpec((1, E), lambda n, t: (0, 0)),
            pl.BlockSpec((E, HD), lambda n, t: (0, 0)),
            pl.BlockSpec((E, HD), lambda n, t: (0, 0)),
            pl.BlockSpec((E, HD), lambda n, t: (0, 0)),
        ],
        out_specs=[
            pl.BlockSpec((1, block_l, HD), lambda n, t: (n, t, 0)),
            pl.BlockSpec((1, block_l, HD), lambda n, t: (n, t, 0)),
            pl.BlockSpec((1, block_l, HD), lambda n, t: (n, t, 0)),
        ],
    )
    q_flat, k_flat, v_flat = pl.pallas_call(
        functools.partial(_ln_qkv_kernel, compute_dtype=compute_dtype),
        out_shape=(jax.ShapeDtypeStruct((N, L, HD), f32),
                   jax.ShapeDtypeStruct((N, L, HD), f32),
                   jax.ShapeDtypeStruct((N, L, HD), f32)),
        grid_spec=qkv_grid,
        compiler_params=pltpu.CompilerParams(
            dimension_semantics=("parallel", "parallel"),
            vmem_limit_bytes=vmem_limit_bytes),
        cost_estimate=qkv_cost,
    )(tokens, ln_gamma, ln_beta, wq, wk, wv)

    # Head split / (N, H, L, Dh) layout done lane-dense in XLA, outside the
    # kernels; K/V in this layout ARE the module outputs (kept in f32).
    k_heads = k_flat.reshape(N, L, H, Dh).transpose(0, 2, 1, 3)
    v_heads = v_flat.reshape(N, L, H, Dh).transpose(0, 2, 1, 3)
    q_heads = q_flat.reshape(N, L, H, Dh).transpose(0, 2, 1, 3)

    q_c = q_heads.astype(compute_dtype)
    k_c = k_heads.astype(compute_dtype)
    v_c = v_heads.astype(compute_dtype)

    # ------------- Kernel 2: causal flash attention + out-proj -------------
    attn_cost = pl.CostEstimate(
        flops=2 * N * H * L * L * Dh + 2 * N * L * HD * E,
        transcendentals=N * H * L * L // 2 + N * H * L,
        bytes_accessed=3 * cdt_bytes * N * L * HD + 2 * 4 * N * L * E
                       + cdt_bytes * HD * E)

    def kv_map(n, qi, kv):
        # Above-diagonal kv tiles are never computed; map them to the diagonal
        # block so no extra DMA is issued for the skipped iterations.
        return (n, 0, jnp.minimum(kv, qi), 0)

    attn_grid = pltpu.PrefetchScalarGridSpec(
        num_scalar_prefetch=0,
        grid=(N, n_tiles, n_tiles),
        in_specs=[
            pl.BlockSpec((1, block_l, E), lambda n, qi, kv: (n, qi, 0)),
            pl.BlockSpec((1, H, block_l, Dh), lambda n, qi, kv: (n, 0, qi, 0)),
            pl.BlockSpec((1, H, block_l, Dh), kv_map),
            pl.BlockSpec((1, H, block_l, Dh), kv_map),
            pl.BlockSpec((H, Dh, E), lambda n, qi, kv: (0, 0, 0)),
        ],
        out_specs=pl.BlockSpec((1, block_l, E), lambda n, qi, kv: (n, qi, 0)),
        scratch_shapes=[
            pltpu.VMEM((H, block_l, 1), f32),     # running max m
            pltpu.VMEM((H, block_l, 1), f32),     # running denom l
            pltpu.VMEM((H, block_l, Dh), f32),    # output accumulator
        ],
    )
    out = pl.pallas_call(
        functools.partial(_flash_attn_kernel, num_heads=H,
                          compute_dtype=compute_dtype,
                          approx_recip=approx_recip),
        out_shape=jax.ShapeDtypeStruct((N, L, E), f32),
        grid_spec=attn_grid,
        compiler_params=pltpu.CompilerParams(
            dimension_semantics=("parallel", "parallel", "arbitrary"),
            vmem_limit_bytes=vmem_limit_bytes),
        cost_estimate=attn_cost,
    )(tokens, q_c, k_c, v_c, wout3)

    return out, k_heads, v_heads


def _reference(tokens, ln_gamma, ln_beta, w_qkv, w_out, *, num_heads, head_dim):
    """Pure-JAX reference mirroring the PyTorch forward."""
    N, L, E = tokens.shape
    HD = num_heads * head_dim
    mean = jnp.mean(tokens, axis=-1, keepdims=True)
    var = jnp.mean((tokens - mean) ** 2, axis=-1, keepdims=True)
    ln = (tokens - mean) / jnp.sqrt(var + 1e-5) * ln_gamma[0] + ln_beta[0]
    qkv = ln @ w_qkv                                        # (N, L, 3*H*Dh)
    qkv = qkv.reshape(N, L, 3, num_heads, head_dim).transpose(2, 0, 3, 1, 4)
    q, k, v = qkv[0], qkv[1], qkv[2]                        # (N, H, L, Dh)
    scores = jnp.einsum("nhld,nhmd->nhlm", q, k) / math.sqrt(head_dim)
    mask = jnp.tril(jnp.ones((L, L), bool))
    scores = jnp.where(mask, scores, -jnp.inf)
    attn = jax.nn.softmax(scores, axis=-1)
    wv = jnp.einsum("nhlm,nhmd->nhld", attn, v)             # (N, H, L, Dh)
    agg = wv.transpose(0, 2, 1, 3).reshape(N, L, HD)
    out = agg @ w_out + tokens
    return out, k, v


if __name__ == "__main__":
    # Small shapes: batch=2, seq=8, embedding_dim=32, heads=4, head_dim=8
    N, L, E = 2, 8, 32
    H, Dh = 4, 8
    HD = H * Dh

    key = jax.random.PRNGKey(0)
    k_tok, k_qkv, k_out = jax.random.split(key, 3)

    tokens = jax.random.normal(k_tok, (N, L, E), dtype=jnp.float32)

    bound_qkv = 1.0 / math.sqrt(E)
    bound_out = 1.0 / math.sqrt(HD)
    # Stored pre-transposed so the kernel computes x @ W (PyTorch does x @ W.T).
    w_qkv = jax.random.uniform(k_qkv, (E, 3 * HD), jnp.float32, -bound_qkv, bound_qkv)
    w_out = jax.random.uniform(k_out, (HD, E), jnp.float32, -bound_out, bound_out)
    ln_gamma = jnp.ones((1, E), jnp.float32)   # LayerNorm weight
    ln_beta = jnp.zeros((1, E), jnp.float32)   # LayerNorm bias

    ref_out, ref_k, ref_v = _reference(
        tokens, ln_gamma, ln_beta, w_qkv, w_out, num_heads=H, head_dim=Dh)

    # Fast path: bf16 MXU inputs, f32 accumulation (looser tolerance).
    out, k_h, v_h = multi_head_causal_attention(
        tokens, ln_gamma, ln_beta, w_qkv, w_out,
        num_heads=H, head_dim=Dh, compute_dtype=jnp.bfloat16)
    jax.block_until_ready((out, k_h, v_h))
    assert jnp.allclose(out, ref_out, atol=3e-2, rtol=3e-2)
    assert jnp.allclose(k_h, ref_k, atol=3e-2, rtol=3e-2)
    assert jnp.allclose(v_h, ref_v, atol=3e-2, rtol=3e-2)

    # Full-precision path: tight check against the f32 reference.
    out32, k32, v32 = multi_head_causal_attention(
        tokens, ln_gamma, ln_beta, w_qkv, w_out,
        num_heads=H, head_dim=Dh, compute_dtype=jnp.float32)
    jax.block_until_ready((out32, k32, v32))
    assert jnp.allclose(out32, ref_out, atol=5e-4, rtol=5e-4)
    assert jnp.allclose(k32, ref_k, atol=5e-4, rtol=5e-4)
    assert jnp.allclose(v32, ref_v, atol=5e-4, rtol=5e-4)

    print("KERNEL_OK")
</pallas_src>

<mosaic_0001>
module attributes {stable_mosaic.version = 11 : i64} {
  func.func @_ln_qkv_kernel(%arg0: i32, %arg1: i32, %arg2: memref<1x8x32xf32, #tpu.memory_space<vmem>>, %arg3: memref<1x32xf32, #tpu.memory_space<vmem>>, %arg4: memref<1x32xf32, #tpu.memory_space<vmem>>, %arg5: memref<32x32xbf16, #tpu.memory_space<vmem>>, %arg6: memref<32x32xbf16, #tpu.memory_space<vmem>>, %arg7: memref<32x32xbf16, #tpu.memory_space<vmem>>, %arg8: memref<1x8x32xf32, #tpu.memory_space<vmem>>, %arg9: memref<1x8x32xf32, #tpu.memory_space<vmem>>, %arg10: memref<1x8x32xf32, #tpu.memory_space<vmem>>) attributes {dimension_semantics = [#tpu.dimension_semantics<parallel>, #tpu.dimension_semantics<parallel>], iteration_bounds = array<i64: 2, 1>, scalar_prefetch = 0 : i64, scratch_operands = 0 : i64, tpu.core_type = #tpu.core_type<tc>, window_params = [{transform_indices = @transform_0, window_bounds = array<i64: 1, 8, 32>}, {pipeline_mode = #tpu.pipeline_mode<synchronous>, transform_indices = @transform_1, window_bounds = array<i64: 1, 32>}, {pipeline_mode = #tpu.pipeline_mode<synchronous>, transform_indices = @transform_2, window_bounds = array<i64: 1, 32>}, {pipeline_mode = #tpu.pipeline_mode<synchronous>, transform_indices = @transform_3, window_bounds = array<i64: 32, 32>}, {pipeline_mode = #tpu.pipeline_mode<synchronous>, transform_indices = @transform_4, window_bounds = array<i64: 32, 32>}, {pipeline_mode = #tpu.pipeline_mode<synchronous>, transform_indices = @transform_5, window_bounds = array<i64: 32, 32>}, {transform_indices = @transform_6, window_bounds = array<i64: 1, 8, 32>}, {transform_indices = @transform_7, window_bounds = array<i64: 1, 8, 32>}, {transform_indices = @transform_8, window_bounds = array<i64: 1, 8, 32>}]} {
    %c0 = arith.constant 0 : index
    %c0_0 = arith.constant 0 : index
    %c0_1 = arith.constant 0 : index
    %0 = vector.load %arg2[%c0, %c0_0, %c0_1] : memref<1x8x32xf32, #tpu.memory_space<vmem>>, vector<1x8x32xf32>
    %1 = vector.shape_cast %0 : vector<1x8x32xf32> to vector<8x32xf32>
    %cst = arith.constant dense<0.000000e+00> : vector<8xf32>
    %2 = vector.multi_reduction <add>, %1, %cst [1] : vector<8x32xf32> to vector<8xf32>
    %3 = vector.shape_cast %2 : vector<8xf32> to vector<8x1xf32>
    %cst_2 = arith.constant 3.200000e+01 : f32
    %4 = vector.broadcast %cst_2 : f32 to vector<8x1xf32>
    %5 = arith.divf %3, %4 : vector<8x1xf32>
    %6 = vector.broadcast %5 : vector<8x1xf32> to vector<8x32xf32>
    %7 = arith.subf %1, %6 : vector<8x32xf32>
    %8 = arith.mulf %7, %7 : vector<8x32xf32>
    %cst_3 = arith.constant dense<0.000000e+00> : vector<8xf32>
    %9 = vector.multi_reduction <add>, %8, %cst_3 [1] : vector<8x32xf32> to vector<8xf32>
    %10 = vector.shape_cast %9 : vector<8xf32> to vector<8x1xf32>
    %cst_4 = arith.constant 3.200000e+01 : f32
    %11 = vector.broadcast %cst_4 : f32 to vector<8x1xf32>
    %12 = arith.divf %10, %11 : vector<8x1xf32>
    %cst_5 = arith.constant 9.99999974E-6 : f32
    %13 = vector.broadcast %cst_5 : f32 to vector<8x1xf32>
    %14 = arith.addf %12, %13 : vector<8x1xf32>
    %15 = math.rsqrt %14 : vector<8x1xf32>
    %16 = vector.broadcast %15 : vector<8x1xf32> to vector<8x32xf32>
    %17 = arith.mulf %7, %16 : vector<8x32xf32>
    %c0_6 = arith.constant 0 : index
    %c0_7 = arith.constant 0 : index
    %18 = vector.load %arg3[%c0_6, %c0_7] : memref<1x32xf32, #tpu.memory_space<vmem>>, vector<1x32xf32>
    %19 = vector.shape_cast %18 : vector<1x32xf32> to vector<32xf32>
    %20 = vector.shape_cast %19 : vector<32xf32> to vector<1x32xf32>
    %21 = vector.broadcast %20 : vector<1x32xf32> to vector<8x32xf32>
    %22 = arith.mulf %17, %21 : vector<8x32xf32>
    %c0_8 = arith.constant 0 : index
    %c0_9 = arith.constant 0 : index
    %23 = vector.load %arg4[%c0_8, %c0_9] : memref<1x32xf32, #tpu.memory_space<vmem>>, vector<1x32xf32>
    %24 = vector.shape_cast %23 : vector<1x32xf32> to vector<32xf32>
    %25 = vector.shape_cast %24 : vector<32xf32> to vector<1x32xf32>
    %26 = vector.broadcast %25 : vector<1x32xf32> to vector<8x32xf32>
    %27 = arith.addf %22, %26 : vector<8x32xf32>
    %28 = arith.truncf %27 : vector<8x32xf32> to vector<8x32xbf16>
    %c0_10 = arith.constant 0 : index
    %c0_11 = arith.constant 0 : index
    %29 = vector.load %arg5[%c0_10, %c0_11] : memref<32x32xbf16, #tpu.memory_space<vmem>>, vector<32x32xbf16>
    %cst_12 = arith.constant dense<0.000000e+00> : vector<8x32xf32>
    %30 = tpu.matmul %28, %29, %cst_12 {dimension_numbers = #tpu.dot_dimension_numbers<[1], [0], [0], [1], [0, 0, 1, 1], [], []>} : vector<8x32xbf16>, vector<32x32xbf16>, vector<8x32xf32> -> vector<8x32xf32>
    %c0_13 = arith.constant 0 : index
    %c0_14 = arith.constant 0 : index
    %c0_15 = arith.constant 0 : index
    %31 = vector.load %arg8[%c0_13, %c0_14, %c0_15] : memref<1x8x32xf32, #tpu.memory_space<vmem>>, vector<1x8x32xf32>
    %32 = vector.shape_cast %31 : vector<1x8x32xf32> to vector<8x32xf32>
    %33 = vector.shape_cast %30 : vector<8x32xf32> to vector<1x8x32xf32>
    tpu.vector_store %arg8[%c0_13, %c0_14, %c0_15], %33 {strides = array<i32>} : memref<1x8x32xf32, #tpu.memory_space<vmem>>, vector<1x8x32xf32>,
    %c0_16 = arith.constant 0 : index
    %c0_17 = arith.constant 0 : index
    %34 = vector.load %arg6[%c0_16, %c0_17] : memref<32x32xbf16, #tpu.memory_space<vmem>>, vector<32x32xbf16>
    %cst_18 = arith.constant dense<0.000000e+00> : vector<8x32xf32>
    %35 = tpu.matmul %28, %34, %cst_18 {dimension_numbers = #tpu.dot_dimension_numbers<[1], [0], [0], [1], [0, 0, 1, 1], [], []>} : vector<8x32xbf16>, vector<32x32xbf16>, vector<8x32xf32> -> vector<8x32xf32>
    %c0_19 = arith.constant 0 : index
    %c0_20 = arith.constant 0 : index
    %c0_21 = arith.constant 0 : index
    %36 = vector.load %arg9[%c0_19, %c0_20, %c0_21] : memref<1x8x32xf32, #tpu.memory_space<vmem>>, vector<1x8x32xf32>
    %37 = vector.shape_cast %36 : vector<1x8x32xf32> to vector<8x32xf32>
    %38 = vector.shape_cast %35 : vector<8x32xf32> to vector<1x8x32xf32>
    tpu.vector_store %arg9[%c0_19, %c0_20, %c0_21], %38 {strides = array<i32>} : memref<1x8x32xf32, #tpu.memory_space<vmem>>, vector<1x8x32xf32>,
    %c0_22 = arith.constant 0 : index
    %c0_23 = arith.constant 0 : index
    %39 = vector.load %arg7[%c0_22, %c0_23] : memref<32x32xbf16, #tpu.memory_space<vmem>>, vector<32x32xbf16>
    %cst_24 = arith.constant dense<0.000000e+00> : vector<8x32xf32>
    %40 = tpu.matmul %28, %39, %cst_24 {dimension_numbers = #tpu.dot_dimension_numbers<[1], [0], [0], [1], [0, 0, 1, 1], [], []>} : vector<8x32xbf16>, vector<32x32xbf16>, vector<8x32xf32> -> vector<8x32xf32>
    %c0_25 = arith.constant 0 : index
    %c0_26 = arith.constant 0 : index
    %c0_27 = arith.constant 0 : index
    %41 = vector.load %arg10[%c0_25, %c0_26, %c0_27] : memref<1x8x32xf32, #tpu.memory_space<vmem>>, vector<1x8x32xf32>
    %42 = vector.shape_cast %41 : vector<1x8x32xf32> to vector<8x32xf32>
    %43 = vector.shape_cast %40 : vector<8x32xf32> to vector<1x8x32xf32>
    tpu.vector_store %arg10[%c0_25, %c0_26, %c0_27], %43 {strides = array<i32>} : memref<1x8x32xf32, #tpu.memory_space<vmem>>, vector<1x8x32xf32>,
    return
  }
  func.func @transform_0(%arg0: i32, %arg1: i32) -> (i32, i32, i32) {
    %c0_i32 = arith.constant 0 : i32
    %c0_i32_0 = arith.constant 0 : i32
    return %arg0, %arg1, %c0_i32 : i32, i32, i32
  }
  func.func @transform_1(%arg0: i32, %arg1: i32) -> (i32, i32) {
    %c0_i32 = arith.constant 0 : i32
    %c0_i32_0 = arith.constant 0 : i32
    %c0_i32_1 = arith.constant 0 : i32
    return %c0_i32, %c0_i32_0 : i32, i32
  }
  func.func @transform_2(%arg0: i32, %arg1: i32) -> (i32, i32) {
    %c0_i32 = arith.constant 0 : i32
    %c0_i32_0 = arith.constant 0 : i32
    %c0_i32_1 = arith.constant 0 : i32
    return %c0_i32, %c0_i32_0 : i32, i32
  }
  func.func @transform_3(%arg0: i32, %arg1: i32) -> (i32, i32) {
    %c0_i32 = arith.constant 0 : i32
    %c0_i32_0 = arith.constant 0 : i32
    %c0_i32_1 = arith.constant 0 : i32
    return %c0_i32, %c0_i32_0 : i32, i32
  }
  func.func @transform_4(%arg0: i32, %arg1: i32) -> (i32, i32) {
    %c0_i32 = arith.constant 0 : i32
    %c0_i32_0 = arith.constant 0 : i32
    %c0_i32_1 = arith.constant 0 : i32
    return %c0_i32, %c0_i32_0 : i32, i32
  }
  func.func @transform_5(%arg0: i32, %arg1: i32) -> (i32, i32) {
    %c0_i32 = arith.constant 0 : i32
    %c0_i32_0 = arith.constant 0 : i32
    %c0_i32_1 = arith.constant 0 : i32
    return %c0_i32, %c0_i32_0 : i32, i32
  }
  func.func @transform_6(%arg0: i32, %arg1: i32) -> (i32, i32, i32) {
    %c0_i32 = arith.constant 0 : i32
    %c0_i32_0 = arith.constant 0 : i32
    return %arg0, %arg1, %c0_i32 : i32, i32, i32
  }
  func.func @transform_7(%arg0: i32, %arg1: i32) -> (i32, i32, i32) {
    %c0_i32 = arith.constant 0 : i32
    %c0_i32_0 = arith.constant 0 : i32
    return %arg0, %arg1, %c0_i32 : i32, i32, i32
  }
  func.func @transform_8(%arg0: i32, %arg1: i32) -> (i32, i32, i32) {
    %c0_i32 = arith.constant 0 : i32
    %c0_i32_0 = arith.constant 0 : i32
    return %arg0, %arg1, %c0_i32 : i32, i32, i32
  }
}

</mosaic_0001>

<bundles_post_ra>
// kernel: tpu_custom_call.1
= control target key start
LH: loop header
LB: loop body
LE: loop exit
PB: predicated region body
PF: predicated region fallthrough
CT: control target
= control target key end

     0   :  { %s1582_s0 = inlined_call_operand.hbm [shape: f32[2,8,32], index: 0, kind: input, shape index: {}]   ;;  %s1583_s1 = inlined_call_operand.hbm [shape: f32[1,32], index: 1, kind: input, shape index: {}]   ;;  %s1584_s2 = inlined_call_operand.vmem [shape: f32[1,32], index: 2, kind: input, shape index: {}]   ;;  %s1585_s3 = inlined_call_operand.hbm [shape: bf16[32,32], index: 3, kind: input, shape index: {}]   ;;  %s1586_s4 = inlined_call_operand.hbm [shape: bf16[32,32], index: 4, kind: input, shape index: {}]   ;;  %s1587_s5 = inlined_call_operand.hbm [shape: bf16[32,32], index: 5, kind: input, shape index: {}]   ;;  %s1588_s6 = inlined_call_operand.hbm [shape: f32[2,8,32], index: 6, kind: output, shape index: {0}]   ;;  %s1589_s7 = inlined_call_operand.hbm [shape: f32[2,8,32], index: 7, kind: output, shape index: {1}]   ;;  %s1590_s8 = inlined_call_operand.hbm [shape: f32[2,8,32], index: 8, kind: output, shape index: {2}]  }
   0x1   :  { %1596 = sst [smem:[#allocation22_spill]] %s1582_s0 }
   0x2   :  { %1597 = sst [smem:[#allocation23_spill]] %s1583_s1 }
   0x3   :  { %1598 = sst [smem:[#allocation24_spill]] %s1584_s2 }
   0x4   :  { %1599 = sst [smem:[#allocation25_spill]] %s1585_s3 }
   0x5   :  { %1600 = sst [smem:[#allocation26_spill]] %s1586_s4 }
   0x6   :  { %14 = vsyncpa [#allocation3], 0 }
   0x7   :  { %16 = vsyncpa [#allocation3 + $0x1], 0 }
   0x8   :  { %17 = vsyncpa [#allocation6], 0 }
   0x9   :  { %18 = vsyncpa [#allocation9], 0 }
   0xa   :  { %19 = vsyncpa [#allocation4], 0 }
   0xb   :  { %21 = vsyncpa [#allocation4 + $0x1], 0 }
   0xc   :  { %22 = vsyncpa [#allocation13], 0 }
   0xd   :  { %24 = vsyncpa [#allocation13 + $0x1], 0  ;;  %s1338_s27 = smov 0   ;;  %s1340_s28 = smov 0  }
   0xe   :  { %s1342_s29 = smov 0   ;;  %s1344_s30 = smov 0  }
   0xf   :  { %s1346_s9 = smov 0   ;;  %s1348_s10 = smov 0  }
  0x10 LB: > { %s1369_s11 = sadd.s32 4294967295, %s1284_s10   ;;  %p804_p0 = scmp.ge.s32.totalorder %s1284_s10, 1  ;;  %s1284_s10 = sphi %s1348_s10, %s30_s10   ;;  %s1280_s9 = sphi %s1346_s9, %s1625_s9   ;;  %s1276_s30 = sphi %s1344_s30, %s1624_s30   ;;  %s1272_s29 = sphi %s1342_s29, %s1623_s29   ;;  %s1268_s28 = sphi %s1340_s28, %s1622_s28   ;;  %s1264_s27 = sphi %s1338_s27, %s1621_s27  }
  0x11   : > { %p65_p1 = scmp.eq.s32.totalorder %s1369_s11, 0  ;;  %p264_p2 = scmp.lt.s32.totalorder %s1284_s10, 3 }
  0x12   : > { %s1601_s1 = sld [smem:[#allocation23_spill]]  ;;  %p809_p4 = scmp.ge.s32.totalorder %s1284_s10, 2 }
  0x13   : > { %p1377_p3 = pnand %p804_p0, %p264_p2  ;;  %s1286_s16 = smov [#allocation5]  }
  0x14   : > { %s278_s17 = sshll.u32 %s1286_s16, 4  ;;  %s1604_s4 = sld [smem:[#allocation26_spill]]  ;;  %s279_s17 = int_to_ptr.vmem [resolvable:$true] %s278_s17 }
  0x15   : > { %p886_p5 = pneg %p1377_p3  ;;  %s1287_s22 = smov [#allocation8]  }
  0x16   : > { %s306_s23 = sshll.u32 %s1287_s22, 4  ;;  %s1605_s3 = sld [smem:[#allocation25_spill]]  ;;  %s307_s23 = int_to_ptr.vmem [resolvable:$true] %s306_s23 }
  0x17   : > { %p1386_p6 = pnand %p886_p5, %p65_p1  ;;  %s1288_s12 = smov 64  }
  0x18   : > { %s276_s14 = sshll.u32 %s1601_s1, 4  ;;  %s1289_s13 = smov 4   ;;  %s277_s14 = int_to_ptr.hbm [resolvable:$true] %s276_s14 }
  0x19   : > { %889 = dma.hbm_to_vmem [thread:$0]  (!%p1386_p6), %s277_s14, 16, %s279_s17, [#allocation6]  }
  0x1a   : > { %s304_s21 = sshll.u32 %s1604_s4, 4  ;;  %s318_s17 = sshll.u32 %s1587_s5, 4  ;;  %s305_s21 = int_to_ptr.hbm [resolvable:$true] %s304_s21  ;;  %s319_s17 = int_to_ptr.hbm [resolvable:$true] %s318_s17 }
  0x1b   : > { %895 = dma.hbm_to_vmem [thread:$0]  (!%p1386_p6), %s305_s21, 256, %s307_s23, [#allocation9], %s1288_s12, %s1288_s12, %s1289_s13  }
  0x1c   : > { %s290_s26 = sshll.u32 %s1605_s3, 4  ;;  %s1290_s19 = smov [#allocation7]   ;;  %s291_s26 = int_to_ptr.hbm [resolvable:$true] %s290_s26 }
  0x1d   : > { %s292_s20 = sshll.u32 %s1290_s19, 4  ;;  %s1291_s22 = smov [#allocation10]   ;;  %s293_s20 = int_to_ptr.vmem [resolvable:$true] %s292_s20 }
  0x1e   : > { %892 = dma.hbm_to_vmem [thread:$0]  (!%p1386_p6), %s291_s26, 256, %s293_s20, [#allocation6], %s1288_s12, %s1288_s12, %s1289_s13  }
  0x1f   : > { %s320_s24 = sshll.u32 %s1291_s22, 4  ;;  %s42_s21 = sadd.s32 1, %s1280_s9  ;;  %s321_s24 = int_to_ptr.vmem [resolvable:$true] %s320_s24 }
  0x20   : > { %898 = dma.hbm_to_vmem [thread:$0]  (!%p1386_p6), %s319_s17, 256, %s321_s24, [#allocation9], %s1288_s12, %s1288_s12, %s1289_s13  }
  0x21   : > { %s1591_s23 = sadd.s32 4294967294, %s1284_s10   ;;  %p44_p7 = scmp.ge.s32.totalorder %s42_s21, 2 }
  0x22   : > { %s51_s25 = sadd.s32 1, %s1272_s29  ;;  %p58_p8 = scmp.ne.s32.totalorder %s1272_s29, %s1268_s28 }
  0x23   : > { %s1627_s21 = smov (%p44_p7, %s42_s21), 0  ;;  %p59_p9 = scmp.eq.s32.totalorder %s1284_s10, 0 }
  0x24   : > { %p64_p10 = scmp.ne.s32.totalorder %s1268_s28, %s1264_s27  ;;  %s46_s26 = ssub.s32 %s1280_s9, %s1627_s21 }
  0x25   : > { %p195_p11 = scmp.eq.s32.totalorder %s1369_s11, 1  ;;  %p49_p12 = scmp.eq.s32.totalorder %s46_s26, 0 }
  0x26   : > { %p1422_p13 = por %p65_p1, %p64_p10  ;;  %p201_p2 = scmp.eq.s32.totalorder %s1591_s23, 1 }
  0x27   : > { %p1426_p0 = por %p195_p11, %p58_p8  ;;  %p60_p5 = por %p59_p9, %p58_p8 }
  0x28   : > { %s1433_s13 = scalar_select %p49_p12, %s1272_s29, %s51_s25  }
  0x29   : > { %p1435_p6 = por %p201_p2, %p64_p10  ;;  %s334_s14 = sand.u32 1, %s1272_s29  }
  0x2a   : > { %s811_s17 = sshll.u32 %s1280_s9, 3  ;;  %p917_p7 = scmp.lt.s32.totalorder %s1284_s10, 2 }
  0x2b   : > { %s810_s19 = sshll.u32 %s334_s14, 3  ;;  %s1609_s0 = sld [smem:[#allocation22_spill]] }
  0x2c   : > { %s338_s1 = scalar_lea.vmem [#allocation2], %s810_s19  ;;  %p900_p11 = pnand %p917_p7, %p60_p5 }
  0x2d   : > { %s347_s3 = sshll.u32 %s338_s1, 4  ;;  %s335_s25 = scalar_lea.sflag [#allocation3], %s334_s14  ;;  %s348_s3 = int_to_ptr.vmem [resolvable:$true] %s347_s3 }
  0x2f   : > { %356 = sbr.rel (%p1377_p3) target bundleno = 497 (0x1f1), region = 44 }
  0x31   : > { %s343_s24 = scalar_lea.hbm %s1609_s0, %s811_s17 }
  0x32   : > { %s345_s26 = sshll.u32 %s343_s24, 4  ;;  %s346_s26 = int_to_ptr.hbm [resolvable:$true] %s345_s26 }
  0x33   : > { %902 = dma.hbm_to_vmem [thread:$0]  (!%p900_p11), %s346_s26, 128, %s348_s3, %s335_s25  }
  0x34   : > { %s1448_s23 = sand.u32 1, %s1268_s28  }
  0x35   : > { %s1451_s4 = sshll.u32 %s1448_s23, 3  ;;  %s359_s17 = scalar_lea.sflag [#allocation3], %s1448_s23 }
  0x36   : > { %s362_s19 = scalar_lea.vmem [#allocation2], %s1451_s4 }
  0x37   : > { %1243 = dma.done.wait (%p1422_p13), %s359_s17, 128  }
  0x38   : > { %1245 = vsyncadd (%p1422_p13), %s359_s17, 4294967168 }
  0x39   : > { %1247 = dma.done.wait (%p65_p1), [#allocation6], 272  }
  0x3a   : > { %1249 = vsyncadd (%p65_p1), [#allocation6], 4294967024 }
  0x3b   : > { %1251 = dma.done.wait (%p65_p1), [#allocation9], 512  }
  0x3c   : > { %1253 = vsyncadd (%p65_p1), [#allocation9], 4294966784  ;;  %vm428_vm0 = vcmask 261120   ;;  %v427_v0 = vld [vmem:[%s362_s19] sm:$0xff]  ;;  %v1292_v2 = vmov 32.0   ;;  %v856_v17 = vld [vmem:[#allocation7] sm:$0xff] }
  0x3d   : > { %v429_v1 = vsel %vm428_vm0, %v427_v0, 0.0  ;;  %980 = vrcp.f32 %v1292_v2  ;;  %v857_v14 = vld [vmem:[#allocation7 + $0x8] sm:$0xff]  ;;  %v859_v15 = vld [vmem:[#allocation8 + $0x8] sm:$0xff]  ;;  %v858_v18 = vld [vmem:[#allocation8] sm:$0xff]  ;;  %s1610_s2 = sld [smem:[#allocation24_spill]]  ;;  %s851_s15 = sshll.u32 %s1276_s30, 3 }
  0x3e   : > { %430 = vadd.xlane.f32.xlu0 %v429_v1  ;;  %v861_v16 = vld [vmem:[#allocation10 + $0x8] sm:$0xff]  ;;  %494 = vmatpush.bf16.msra.mxu0 %v857_v14  ;;  %v860_v19 = vld [vmem:[#allocation10] sm:$0xff]  ;;  %v978_v29 = vld [vmem:[#allocation5] ss:$0 sm:$0xff]  ;;  %s584_s22 = scalar_lea.hbm %s1588_s6, %s851_s15  ;;  %s599_s25 = scalar_lea.hbm %s1589_s7, %s851_s15 }
  0x3f   : > { %524 = vmatpush.bf16.msra.mxu1 %v859_v15  ;;  %554 = vmatpush.bf16.msra.mxu2 %v861_v16  ;;  %s411_s17 = scalar_lea.vmem [#allocation11], %s1451_s4  ;;  %s1486_s1 = sshll.u32 %s584_s22, 4  ;;  %s589_s1 = int_to_ptr.hbm [resolvable:$true] %s1486_s1 }
  0x40   : > { %s1484_s19 = sshll.u32 %s411_s17, 4  ;;  %s418_s30 = scalar_lea.vmem [#allocation12], %s1451_s4  ;;  %s587_s19 = int_to_ptr.vmem [resolvable:$true] %s1484_s19 }
  0x41   : > { %s1489_s3 = sshll.u32 %s418_s30, 4  ;;  %s1491_s14 = sshll.u32 %s599_s25, 4 }
  0x42   : > { %495 = vmatpush.bf16.msra.mxu0 %v856_v17  ;;  %1611 = sst [smem:[#allocation20_spill]] %s1489_s3  ;;  %s614_s24 = scalar_lea.hbm %s1590_s8, %s851_s15 }
  0x43   : > { %v981_v3 = vpop.eup %980  ;;  %525 = vmatpush.bf16.msra.mxu1 %v858_v18  ;;  %555 = vmatpush.bf16.msra.mxu2 %v860_v19  ;;  %v979_v32 = vld [vmem:[%s1610_s2] ss:$0 sm:$0xff]  ;;  %1612 = sst [smem:[#allocation21_spill]] %s1491_s14  ;;  %s1595_s22 = scalar_lea.vmem [#allocation14], %s1451_s4 }
  0x44   : > { %v433_v4 = vmul.f32 32.0, %v981_v3  ;;  %vm437_vm1 = vweird.f32 %v981_v3  ;;  %s1504_s26 = sshll.u32 %s1595_s22, 4  ;;  %s1506_s25 = sshll.u32 %s614_s24, 4  ;;  %s617_s26 = int_to_ptr.vmem [resolvable:$true] %s1504_s26  ;;  %s619_s25 = int_to_ptr.hbm [resolvable:$true] %s1506_s25 }
  0x45   : > { %s563_s18 = scalar_lea.sflag [#allocation4], %s1448_s23  ;;  %s1148_s20 = sshra.s32 %s589_s1, 4  ;;  %s1149_s20 = int_to_ptr.hbm [resolvable:$true] %s1148_s20 }
  0x46   : > { %v434_v5 = vsub.f32 1.0, %v433_v4  ;;  %s1150_s15 = scalar_lea.hbm %s1149_s20, 8  ;;  %p1155_p9 = scmp.lt.s32.totalorder %s1149_s20, %s1588_s6 }
  0x47   : > { %p1151_p1 = scmp.ne.s32.totalorder %s1149_s20, %s1150_s15 }
  0x48   : > { %v435_v6 = vmul.f32 %v981_v3, %v434_v5 }
  0x49   : > { %p1152_p3 = pnand %p1151_p1, %p1426_p0 }
  0x4a   : > { %v436_v7 = vadd.f32 %v981_v3, %v435_v6 }
  0x4b   : > { %p1153_p8 = pneg %p1152_p3 }
  0x4c   : > { %v438_v8 = vsel %vm437_vm1, %v981_v3, %v436_v7 }
  0xb1   : > { %v431_v9 = vpop.xlane.xlu0 %430 }
  0xb2   : > { %v439_v10 = vmul.f32 %v438_v8, %v431_v9 }
  0xb4   : > { %v440_v11 = vsub.f32 %v427_v0, %v439_v10 }
  0xb6   : > { %v441_v12 = vmul.f32 %v440_v11, %v440_v11 }
  0xb8   : > { %v442_v13 = vsel %vm428_vm0, %v441_v12, 0.0 }
  0xb9   : > { %443 = vadd.xlane.f32.xlu0 %v442_v13 }
 0x12c   : > { %v444_v20 = vpop.xlane.xlu0 %443 }
 0x12d   : > { %v445_v21 = vmul.f32 %v444_v20, %v438_v8 }
 0x12f   : > { %v446_v22 = vadd.f32 1e-05, %v445_v21 }
 0x131   : > { %982 = vrsqrt.f32 %v446_v22  ;;  %vm453_vm3 = vweird.f32 %v446_v22 }
 0x137   : > { %v983_v23 = vpop.eup %982 }
 0x138   : > { %v448_v24 = vmul.f32 %v983_v23, %v446_v22  ;;  %vm454_vm2 = vweird.f32 %v983_v23 }
 0x139   : > { %vm455_vm4 = vmor %vm453_vm3, %vm454_vm2 }
 0x13a   : > { %v449_v25 = vmul.f32 %v983_v23, %v448_v24 }
 0x13c   : > { %v450_v26 = vmul.f32 0.5, %v449_v25 }
 0x13e   : > { %v451_v27 = vsub.f32 1.5, %v450_v26 }
 0x140   : > { %v452_v28 = vmul.f32 %v983_v23, %v451_v27 }
 0x142   : > { %v456_v30 = vsel %vm455_vm4, %v983_v23, %v452_v28 }
 0x143   : > { %v457_v31 = vmul.f32 %v456_v30, %v440_v11 }
 0x145   : > { %v462_v33 = vmul.f32 %v978_v29, %v457_v31 }
 0x147   : > { %v467_v34 = vadd.f32 %v979_v32, %v462_v33 }
 0x149   : > { %v468_v35 = vpack.c.bf16 %v467_v34, %v467_v34 }
 0x14b   : > { %829 = vmatmul.msk.bf16.vlgmr.msra.gmra.mxu0 %vm428_vm0, %v468_v35  ;;  %838 = vmatmul.msk.bf16.vlgmr.msra.gmra.mxu1 %vm428_vm0, %v468_v35 }
 0x14c   : > { %847 = vmatmul.msk.bf16.vlgmr.msra.gmra.mxu2 %vm428_vm0, %v468_v35 }
 0x1c8   : > { %v497_v36 = vpop.f32.mrf.mxu0  ;;  %v527_v37 = vpop.f32.mrf.mxu1 }
 0x1c9   : > { %501 = vst.msk [vmem:[%s411_s17] sm:$0xff] %vm428_vm0, %v497_v36  ;;  %s1154_s17 = scalar_lea.hbm %s1588_s6, 16 }
 0x1ca   : > { %531 = vst.msk [vmem:[%s418_s30] sm:$0xff] %vm428_vm0, %v527_v37  ;;  %p1156_p10 = scmp.lt.s32.totalorder %s1154_s17, %s1150_s15 }
 0x1cc   : > { %p1157_p12 = por %p1156_p10, %p1155_p9 }
 0x1ce   : > { %p1158_p13 = pnand %p1157_p12, %p1153_p8 }
 0x1d0   : > { %1161 = shalt.err (!%p1158_p13)
}
 0x1d1   : > { %s1613_s23 = sld [smem:[#allocation21_spill]]  ;;  %s1614_s30 = sand.u32 1, %s1369_s11  }
 0x1d2   : > { %880 = dma.vmem_to_hbm [thread:$0]  (%p1426_p0), %s587_s19, 128, %s589_s1, %s563_s18  }
 0x1d3   : > { %s1522_s24 = scalar_lea.sflag [#allocation13], %s1614_s30  ;;  %s1182_s20 = scalar_lea.hbm %s1589_s7, 16 }
 0x1d7   : > { %s1615_s22 = int_to_ptr.hbm [resolvable:$true] %s1613_s23 }
 0x1d8   : > { %s1176_s3 = sshra.s32 %s1615_s22, 4  ;;  %s1177_s3 = int_to_ptr.hbm [resolvable:$true] %s1176_s3 }
 0x1d9   : > { %s1178_s14 = scalar_lea.hbm %s1177_s3, 8  ;;  %p1183_p11 = scmp.lt.s32.totalorder %s1177_s3, %s1589_s7 }
 0x1da   : > { %p1179_p2 = scmp.ne.s32.totalorder %s1177_s3, %s1178_s14  ;;  %p1184_p1 = scmp.lt.s32.totalorder %s1182_s20, %s1178_s14 }
 0x1dc   : > { %p1180_p5 = pnand %p1179_p2, %p1426_p0  ;;  %p1185_p3 = por %p1184_p1, %p1183_p11 }
 0x1de   : > { %p1181_p7 = pneg %p1180_p5 }
 0x1e0   : > { %p1186_p8 = pnand %p1185_p3, %p1181_p7 }
 0x1e2   : > { %1189 = shalt.err (!%p1186_p8)
}
 0x1e3   : > { %s1616_s11 = smov %s1615_s22  ;;  %s1617_s19 = sld [smem:[#allocation20_spill]]  ;;  %v557_v38 = vpop.f32.mrf.mxu2  ;;  %v499_v39 = vpop.f32.mrf.mxu0 }
 0x1e4   : > { %s1619_s22 = scalar_lea.vmem [#allocation14], %s1451_s4  ;;  %v529_v40 = vpop.f32.mrf.mxu1  ;;  %s1204_s18 = sshra.s32 %s619_s25, 4  ;;  %s1205_s18 = int_to_ptr.hbm [resolvable:$true] %s1204_s18 }
 0x1e5   : > { %561 = vst.msk [vmem:[%s1619_s22] sm:$0xff] %vm428_vm0, %v557_v38  ;;  %s1206_s30 = scalar_lea.hbm %s1205_s18, 8  ;;  %s1210_s14 = scalar_lea.hbm %s1590_s8, 16 }
 0x1e6   : > { %p1207_p9 = scmp.ne.s32.totalorder %s1205_s18, %s1206_s30  ;;  %p1211_p13 = scmp.lt.s32.totalorder %s1205_s18, %s1590_s8 }
 0x1e7   : > { %p1212_p2 = scmp.lt.s32.totalorder %s1210_s14, %s1206_s30 }
 0x1e8   : > { %p1208_p10 = pnand %p1207_p9, %p1426_p0 }
 0x1e9   : > { %s1618_s1 = int_to_ptr.vmem [resolvable:$true] %s1617_s19  ;;  %p1213_p5 = por %p1212_p2, %p1211_p13 }
 0x1ea   : > { %881 = dma.vmem_to_hbm [thread:$0]  (%p1426_p0), %s1618_s1, 128, %s1616_s11, %s1522_s24  }
 0x1eb   : > { %p1209_p12 = pneg %p1208_p10 }
 0x1ed   : > { %p1214_p7 = pnand %p1213_p5, %p1209_p12 }
 0x1ef   : > { %1217 = shalt.err (!%p1214_p7)
}
 0x1f0   : > { %882 = dma.vmem_to_hbm [thread:$0]  (%p1426_p0), %s617_s26, 128, %s619_s25, %s1522_s24   ;;  %v559_v41 = vpop.f32.mrf.mxu2 }
 0x1f1 PF: > { %s630_s4 = sand.u32 1, %s1264_s27   ;;  %p904_p11 = pnand %p809_p4, %p1435_p6 }
 0x1f2   : > { %s631_s20 = scalar_lea.sflag [#allocation4], %s630_s4 }
 0x1f3   : > { %p905_p1 = pneg %p904_p11 }
 0x1f5   : > { %1255 = dma.done.wait (%p905_p1), %s631_s20, 128  }
 0x1f6   : > { %1257 = vsyncadd (%p905_p1), %s631_s20, 4294967168  ;;  %s1620_s15 = sadd.s32 4294967294, %s1284_s10  }
 0x1f7   : > { %s640_s17 = sand.u32 1, %s1620_s15  }
 0x1f8   : > { %s641_s11 = scalar_lea.sflag [#allocation13], %s640_s17 }
 0x1f9   : > { %1259 = dma.done.wait (%p905_p1), %s641_s11, 256  }
 0x1fa   : > { %1261 = vsyncadd (%p905_p1), %s641_s11, 4294967040  ;;  %s30_s10 = sadd.s32 1, %s1284_s10   ;;  %s1621_s27 = smov %s1268_s28 }
 0x1fb   : > { %p27_p0 = scmp.ge.s32.totalorder %s30_s10, 4   ;;  %s1622_s28 = smov %s1272_s29 }
 0x1fc   : > { %s1623_s29 = smov %s1433_s13  ;;  %s1624_s30 = smov %s1280_s9 }
 0x1fd   : > { %s1625_s9 = smov %s1627_s21  ;;  %29 = sbr.rel (!%p27_p0) target bundleno = 16 (0x10), region = 137 }
 0x202   :  { %657 = vsyncpa [#allocation3], 1 }
 0x203   :  { %659 = vsyncpa [#allocation3 + $0x1], 1 }
 0x204   :  { %660 = vsyncpa [#allocation6], 1 }
 0x205   :  { %661 = vsyncpa [#allocation9], 1 }
 0x206   :  { %662 = vsyncpa [#allocation4], 1 }
 0x207   :  { %664 = vsyncpa [#allocation4 + $0x1], 1 }
 0x208   :  { %665 = vsyncpa [#allocation13], 1 }
 0x209   :  { %667 = vsyncpa [#allocation13 + $0x1], 1 }

</bundles_post_ra>
